<compile_context>
chip_gen: v7x
topology: tpu7x:2x2x1
jax: 0.10.0
libtpu: 0.0.40
codegen_flags: <defaults>
</compile_context>

<pallas_src>
import jax
import jax.numpy as jnp
import numpy as np
from jax import lax
from jax.experimental import pallas as pl
from jax.experimental.pallas import tpu as pltpu

HEADS = 4
OUT_PER_HEAD = 16
HC = HEADS * OUT_PER_HEAD  # 64


def gat_kernel(x_all_ref, x_tile_ref, w_ref, att_src_bd_ref, att_dst_bd_ref,
               bias_ref, adj_ref, w_out_row_ref, b_out_ref, y_ref):
    # Projection. Recomputed per row tile (cheap vs. the [tq, N] attention work) so the
    # row-tile grid axis stays embarrassingly parallel (no cross-step carried state).
    w = w_ref[...]                                                          # [Fin, HC]
    h_all = jnp.dot(x_all_ref[...], w, preferred_element_type=jnp.float32)  # [N,  HC]
    h_t = jnp.dot(x_tile_ref[...], w, preferred_element_type=jnp.float32)   # [tq, HC]

    # All-head attention scores as two MXU matmuls against block-diagonal att matrices:
    #   src_rows[h, j] = <h_all[j, h*C:(h+1)*C], att_src[h]>   (already a row vector)
    #   dst_cols[i, h] = <h_t  [i, h*C:(h+1)*C], att_dst[h]>   (already a column vector)
    src_rows = lax.dot_general(att_src_bd_ref[...], h_all,
                               (((1,), (1,)), ((), ())),
                               preferred_element_type=jnp.float32)          # [H, N]
    dst_cols = jnp.dot(h_t, att_dst_bd_ref[...],
                       preferred_element_type=jnp.float32)                  # [tq, H]

    mask = adj_ref[...] != 0                                                # [tq, N]

    outs = []
    for head in range(HEADS):                                               # static unroll (4)
        lo = head * OUT_PER_HEAD
        # e[i, j] = LeakyReLU(dst_i + src_j, 0.2), softmax over incoming edges j.
        e = dst_cols[:, head:head + 1] + src_rows[head:head + 1, :]         # [tq, N]
        e = jnp.where(e > 0, e, 0.2 * e)
        e = jnp.where(mask, e, jnp.float32(-1e30))
        m = jnp.max(e, axis=-1, keepdims=True)
        p = jnp.exp(e - m)
        denom = jnp.sum(p, axis=-1, keepdims=True)
        alpha = p * pl.reciprocal(denom, approx=True)                       # EUP reciprocal
        # TODO(synk): GATConv dropout(p=0.3) on alpha is training-only; eval semantics here.
        outs.append(jnp.dot(alpha, h_all[:, lo:lo + OUT_PER_HEAD],
                            preferred_element_type=jnp.float32))            # [tq, C]

    # Deferred, lane-dense epilogue: one bias+ELU over [tq, 64], one matmul to a [1, tq] row.
    o = jnp.concatenate(outs, axis=-1) + bias_ref[...]                      # [tq, HC]
    o = jnp.where(o > 0, o, jnp.exp(jnp.minimum(o, 0.0)) - 1.0)             # ELU(alpha=1)
    y_row = lax.dot_general(w_out_row_ref[...], o,
                            (((1,), (1,)), ((), ())),
                            preferred_element_type=jnp.float32)             # [1, tq]
    y_ref[...] = y_row + b_out_ref[...]


def gat_forward(x, adj, params, *, tq=None):
    n, f_in = x.shape
    if tq is None:
        tq = 256 if n % 256 == 0 else n      # toy sizes -> single grid step
    assert n % tq == 0, "n must be a multiple of the row-tile size"

    # Host-side layout plumbing (not compute hoisting): block-diagonal attention matrices
    # so the per-head score reductions become plain MXU matmuls inside the kernel.
    att_src_bd = jnp.zeros((HEADS, HC), jnp.float32)
    att_dst_bd = jnp.zeros((HC, HEADS), jnp.float32)
    for h in range(HEADS):
        lo = h * OUT_PER_HEAD
        att_src_bd = att_src_bd.at[h, lo:lo + OUT_PER_HEAD].set(params["att_src"][h])
        att_dst_bd = att_dst_bd.at[lo:lo + OUT_PER_HEAD, h].set(params["att_dst"][h])
    w_out_row = params["w_out"].T            # [1, HC]
    adj_i8 = adj.astype(jnp.int8)            # mask only: 4x fewer bytes than f32

    full = lambda shape: pl.BlockSpec(shape, lambda i: (0, 0))
    y = pl.pallas_call(
        gat_kernel,
        out_shape=jax.ShapeDtypeStruct((1, n), jnp.float32),
        grid=(n // tq,),
        in_specs=[
            full((n, f_in)),                              # x (all source nodes)
            pl.BlockSpec((tq, f_in), lambda i: (i, 0)),   # x (target-row tile)
            full((f_in, HC)),                             # w
            full((HEADS, HC)),                            # att_src (block-diag rows)
            full((HC, HEADS)),                            # att_dst (block-diag cols)
            full((1, HC)),                                # bias
            pl.BlockSpec((tq, n), lambda i: (i, 0)),      # adj tile (int8)
            full((1, HC)),                                # w_out^T (row)
            full((1, 1)),                                 # b_out
        ],
        out_specs=pl.BlockSpec((1, tq), lambda i: (0, i)),   # lane-dense output row
        compiler_params=pltpu.CompilerParams(
            dimension_semantics=("parallel",)),              # shards tiles across v7x's 2 TCs
    )(x, x, params["w"], att_src_bd, att_dst_bd, params["bias"],
      adj_i8, w_out_row, params["b_out"])
    return y[0]                                              # .squeeze() -> (N,)


def ref_forward(x, adj, p):
    """Pure-JAX reference (eval-mode GATConv + ELU + Linear + squeeze)."""
    h = x @ p["w"]
    outs = []
    for head in range(HEADS):
        h_h = h[:, head * OUT_PER_HEAD:(head + 1) * OUT_PER_HEAD]
        src = h_h @ p["att_src"][head]
        dst = h_h @ p["att_dst"][head]
        e = dst[:, None] + src[None, :]
        e = jnp.where(e > 0, e, 0.2 * e)
        e = jnp.where(adj > 0, e, -jnp.inf)
        alpha = jax.nn.softmax(e, axis=-1)
        outs.append(alpha @ h_h)
    o = jnp.concatenate(outs, axis=-1) + p["bias"][0]
    o = jax.nn.elu(o)
    return (o @ p["w_out"] + p["b_out"])[:, 0]


if __name__ == "__main__":
    key = jax.random.PRNGKey(0)
    N, F_IN, E = 16, 8, 48
    ks = jax.random.split(key, 8)

    x = jax.random.normal(ks[0], (N, F_IN), jnp.float32)
    src_idx = jax.random.randint(ks[1], (E,), 0, N)
    dst_idx = jax.random.randint(ks[2], (E,), 0, N)

    # Dense int8 mask: adj[i, j] = 1 iff edge j -> i; add self-loops (GATConv default).
    # Note: a dense mask dedupes duplicate edges (differs from PyG only on multigraphs).
    adj = jnp.zeros((N, N), jnp.int8).at[dst_idx, src_idx].set(1)
    adj = jnp.maximum(adj, jnp.eye(N, dtype=jnp.int8))

    params = {
        "w":       0.1 * jax.random.normal(ks[3], (F_IN, HC), jnp.float32),
        "att_src": 0.1 * jax.random.normal(ks[4], (HEADS, OUT_PER_HEAD), jnp.float32),
        "att_dst": 0.1 * jax.random.normal(ks[5], (HEADS, OUT_PER_HEAD), jnp.float32),
        "bias":    jnp.full((1, HC), 0.01, jnp.float32),
        "w_out":   0.1 * jax.random.normal(ks[6], (HC, 1), jnp.float32),
        "b_out":   jnp.full((1, 1), 0.02, jnp.float32),
    }

    y = jax.block_until_ready(gat_forward(x, adj, params))
    y_ref = jax.block_until_ready(ref_forward(x, adj, params))

    assert y.shape == (N,)
    # Slightly relaxed tolerance: softmax denominator uses the EUP approximate reciprocal.
    np.testing.assert_allclose(np.asarray(y), np.asarray(y_ref), rtol=5e-3, atol=5e-4)
    print("KERNEL_OK")
</pallas_src>

<mosaic_0001>
module attributes {stable_mosaic.version = 11 : i64} {
  func.func @gat_kernel(%arg0: i32, %arg1: memref<16x8xf32, #tpu.memory_space<vmem>>, %arg2: memref<16x8xf32, #tpu.memory_space<vmem>>, %arg3: memref<8x64xf32, #tpu.memory_space<vmem>>, %arg4: memref<4x64xf32, #tpu.memory_space<vmem>>, %arg5: memref<64x4xf32, #tpu.memory_space<vmem>>, %arg6: memref<1x64xf32, #tpu.memory_space<vmem>>, %arg7: memref<16x16xi8, #tpu.memory_space<vmem>>, %arg8: memref<1x64xf32, #tpu.memory_space<vmem>>, %arg9: memref<1x1xf32, #tpu.memory_space<vmem>>, %arg10: memref<1x16xf32, #tpu.memory_space<vmem>>) attributes {dimension_semantics = [#tpu.dimension_semantics<parallel>], iteration_bounds = array<i64: 1>, scalar_prefetch = 0 : i64, scratch_operands = 0 : i64, tpu.core_type = #tpu.core_type<tc>, window_params = [{pipeline_mode = #tpu.pipeline_mode<synchronous>, transform_indices = @transform_0, window_bounds = array<i64: 16, 8>}, {transform_indices = @transform_1, window_bounds = array<i64: 16, 8>}, {pipeline_mode = #tpu.pipeline_mode<synchronous>, transform_indices = @transform_2, window_bounds = array<i64: 8, 64>}, {pipeline_mode = #tpu.pipeline_mode<synchronous>, transform_indices = @transform_3, window_bounds = array<i64: 4, 64>}, {pipeline_mode = #tpu.pipeline_mode<synchronous>, transform_indices = @transform_4, window_bounds = array<i64: 64, 4>}, {pipeline_mode = #tpu.pipeline_mode<synchronous>, transform_indices = @transform_5, window_bounds = array<i64: 1, 64>}, {transform_indices = @transform_6, window_bounds = array<i64: 16, 16>}, {pipeline_mode = #tpu.pipeline_mode<synchronous>, transform_indices = @transform_7, window_bounds = array<i64: 1, 64>}, {pipeline_mode = #tpu.pipeline_mode<synchronous>, transform_indices = @transform_8, window_bounds = array<i64: 1, 1>}, {transform_indices = @transform_9, window_bounds = array<i64: 1, 16>}]} {
    %c0 = arith.constant 0 : index
    %c0_0 = arith.constant 0 : index
    %0 = vector.load %arg3[%c0, %c0_0] : memref<8x64xf32, #tpu.memory_space<vmem>>, vector<8x64xf32>
    %c0_1 = arith.constant 0 : index
    %c0_2 = arith.constant 0 : index
    %1 = vector.load %arg1[%c0_1, %c0_2] : memref<16x8xf32, #tpu.memory_space<vmem>>, vector<16x8xf32>
    %cst = arith.constant dense<0.000000e+00> : vector<16x64xf32>
    %2 = tpu.matmul %1, %0, %cst {dimension_numbers = #tpu.dot_dimension_numbers<[1], [0], [0], [1], [0, 0, 1, 1], [], []>} : vector<16x8xf32>, vector<8x64xf32>, vector<16x64xf32> -> vector<16x64xf32>
    %c0_3 = arith.constant 0 : index
    %c0_4 = arith.constant 0 : index
    %3 = vector.load %arg2[%c0_3, %c0_4] : memref<16x8xf32, #tpu.memory_space<vmem>>, vector<16x8xf32>
    %cst_5 = arith.constant dense<0.000000e+00> : vector<16x64xf32>
    %4 = tpu.matmul %3, %0, %cst_5 {dimension_numbers = #tpu.dot_dimension_numbers<[1], [0], [0], [1], [0, 0, 1, 1], [], []>} : vector<16x8xf32>, vector<8x64xf32>, vector<16x64xf32> -> vector<16x64xf32>
    %c0_6 = arith.constant 0 : index
    %c0_7 = arith.constant 0 : index
    %5 = vector.load %arg4[%c0_6, %c0_7] : memref<4x64xf32, #tpu.memory_space<vmem>>, vector<4x64xf32>
    %cst_8 = arith.constant dense<0.000000e+00> : vector<4x16xf32>
    %6 = tpu.matmul %5, %2, %cst_8 {dimension_numbers = #tpu.dot_dimension_numbers<[1], [1], [0], [0], [0, 0, 1, 0], [], []>} : vector<4x64xf32>, vector<16x64xf32>, vector<4x16xf32> -> vector<4x16xf32>
    %c0_9 = arith.constant 0 : index
    %c0_10 = arith.constant 0 : index
    %7 = vector.load %arg5[%c0_9, %c0_10] : memref<64x4xf32, #tpu.memory_space<vmem>>, vector<64x4xf32>
    %cst_11 = arith.constant dense<0.000000e+00> : vector<16x4xf32>
    %8 = tpu.matmul %4, %7, %cst_11 {dimension_numbers = #tpu.dot_dimension_numbers<[1], [0], [0], [1], [0, 0, 1, 1], [], []>} : vector<16x64xf32>, vector<64x4xf32>, vector<16x4xf32> -> vector<16x4xf32>
    %c0_12 = arith.constant 0 : index
    %c0_13 = arith.constant 0 : index
    %9 = vector.load %arg7[%c0_12, %c0_13] : memref<16x16xi8, #tpu.memory_space<vmem>>, vector<16x16xi8>
    %c0_i8 = arith.constant 0 : i8
    %10 = vector.broadcast %c0_i8 : i8 to vector<16x16xi8>
    %11 = arith.cmpi ne, %9, %10 : vector<16x16xi8>
    %12 = vector.extract_strided_slice %8 {offsets = [0, 0], sizes = [16, 1], strides = [1, 1]} : vector<16x4xf32> to vector<16x1xf32>
    %13 = vector.extract_strided_slice %6 {offsets = [0, 0], sizes = [1, 16], strides = [1, 1]} : vector<4x16xf32> to vector<1x16xf32>
    %14 = vector.broadcast %12 : vector<16x1xf32> to vector<16x16xf32>
    %15 = vector.broadcast %13 : vector<1x16xf32> to vector<16x16xf32>
    %16 = arith.addf %14, %15 : vector<16x16xf32>
    %cst_14 = arith.constant 0.000000e+00 : f32
    %17 = vector.broadcast %cst_14 : f32 to vector<16x16xf32>
    %18 = arith.cmpf ogt, %16, %17 : vector<16x16xf32>
    %cst_15 = arith.constant 2.000000e-01 : f32
    %19 = vector.broadcast %cst_15 : f32 to vector<16x16xf32>
    %20 = arith.mulf %19, %16 : vector<16x16xf32>
    %21 = arith.select %18, %16, %20 : vector<16x16xi1>, vector<16x16xf32>
    %cst_16 = arith.constant -1.000000e+30 : f32
    %22 = vector.broadcast %cst_16 : f32 to vector<16x16xf32>
    %23 = arith.select %11, %21, %22 : vector<16x16xi1>, vector<16x16xf32>
    %cst_17 = arith.constant dense<0xFF800000> : vector<16xf32>
    %24 = vector.multi_reduction <maximumf>, %23, %cst_17 [1] : vector<16x16xf32> to vector<16xf32>
    %25 = vector.shape_cast %24 : vector<16xf32> to vector<16x1xf32>
    %26 = vector.broadcast %25 : vector<16x1xf32> to vector<16x16xf32>
    %27 = arith.subf %23, %26 : vector<16x16xf32>
    %28 = math.exp %27 : vector<16x16xf32>
    %cst_18 = arith.constant dense<0.000000e+00> : vector<16xf32>
    %29 = vector.multi_reduction <add>, %28, %cst_18 [1] : vector<16x16xf32> to vector<16xf32>
    %30 = vector.shape_cast %29 : vector<16xf32> to vector<16x1xf32>
    %31 = tpu.reciprocal %30 {approx = true} : vector<16x1xf32> -> vector<16x1xf32>
    %32 = vector.broadcast %31 : vector<16x1xf32> to vector<16x16xf32>
    %33 = arith.mulf %28, %32 : vector<16x16xf32>
    %34 = vector.extract_strided_slice %2 {offsets = [0, 0], sizes = [16, 16], strides = [1, 1]} : vector<16x64xf32> to vector<16x16xf32>
    %cst_19 = arith.constant dense<0.000000e+00> : vector<16x16xf32>
    %35 = tpu.matmul %33, %34, %cst_19 {dimension_numbers = #tpu.dot_dimension_numbers<[1], [0], [0], [1], [0, 0, 1, 1], [], []>} : vector<16x16xf32>, vector<16x16xf32>, vector<16x16xf32> -> vector<16x16xf32>
    %36 = vector.extract_strided_slice %8 {offsets = [0, 1], sizes = [16, 1], strides = [1, 1]} : vector<16x4xf32> to vector<16x1xf32>
    %37 = vector.extract_strided_slice %6 {offsets = [1, 0], sizes = [1, 16], strides = [1, 1]} : vector<4x16xf32> to vector<1x16xf32>
    %38 = vector.broadcast %36 : vector<16x1xf32> to vector<16x16xf32>
    %39 = vector.broadcast %37 : vector<1x16xf32> to vector<16x16xf32>
    %40 = arith.addf %38, %39 : vector<16x16xf32>
    %cst_20 = arith.constant 0.000000e+00 : f32
    %41 = vector.broadcast %cst_20 : f32 to vector<16x16xf32>
    %42 = arith.cmpf ogt, %40, %41 : vector<16x16xf32>
    %cst_21 = arith.constant 2.000000e-01 : f32
    %43 = vector.broadcast %cst_21 : f32 to vector<16x16xf32>
    %44 = arith.mulf %43, %40 : vector<16x16xf32>
    %45 = arith.select %42, %40, %44 : vector<16x16xi1>, vector<16x16xf32>
    %cst_22 = arith.constant -1.000000e+30 : f32
    %46 = vector.broadcast %cst_22 : f32 to vector<16x16xf32>
    %47 = arith.select %11, %45, %46 : vector<16x16xi1>, vector<16x16xf32>
    %cst_23 = arith.constant dense<0xFF800000> : vector<16xf32>
    %48 = vector.multi_reduction <maximumf>, %47, %cst_23 [1] : vector<16x16xf32> to vector<16xf32>
    %49 = vector.shape_cast %48 : vector<16xf32> to vector<16x1xf32>
    %50 = vector.broadcast %49 : vector<16x1xf32> to vector<16x16xf32>
    %51 = arith.subf %47, %50 : vector<16x16xf32>
    %52 = math.exp %51 : vector<16x16xf32>
    %cst_24 = arith.constant dense<0.000000e+00> : vector<16xf32>
    %53 = vector.multi_reduction <add>, %52, %cst_24 [1] : vector<16x16xf32> to vector<16xf32>
    %54 = vector.shape_cast %53 : vector<16xf32> to vector<16x1xf32>
    %55 = tpu.reciprocal %54 {approx = true} : vector<16x1xf32> -> vector<16x1xf32>
    %56 = vector.broadcast %55 : vector<16x1xf32> to vector<16x16xf32>
    %57 = arith.mulf %52, %56 : vector<16x16xf32>
    %58 = vector.extract_strided_slice %2 {offsets = [0, 16], sizes = [16, 16], strides = [1, 1]} : vector<16x64xf32> to vector<16x16xf32>
    %cst_25 = arith.constant dense<0.000000e+00> : vector<16x16xf32>
    %59 = tpu.matmul %57, %58, %cst_25 {dimension_numbers = #tpu.dot_dimension_numbers<[1], [0], [0], [1], [0, 0, 1, 1], [], []>} : vector<16x16xf32>, vector<16x16xf32>, vector<16x16xf32> -> vector<16x16xf32>
    %60 = vector.extract_strided_slice %8 {offsets = [0, 2], sizes = [16, 1], strides = [1, 1]} : vector<16x4xf32> to vector<16x1xf32>
    %61 = vector.extract_strided_slice %6 {offsets = [2, 0], sizes = [1, 16], strides = [1, 1]} : vector<4x16xf32> to vector<1x16xf32>
    %62 = vector.broadcast %60 : vector<16x1xf32> to vector<16x16xf32>
    %63 = vector.broadcast %61 : vector<1x16xf32> to vector<16x16xf32>
    %64 = arith.addf %62, %63 : vector<16x16xf32>
    %cst_26 = arith.constant 0.000000e+00 : f32
    %65 = vector.broadcast %cst_26 : f32 to vector<16x16xf32>
    %66 = arith.cmpf ogt, %64, %65 : vector<16x16xf32>
    %cst_27 = arith.constant 2.000000e-01 : f32
    %67 = vector.broadcast %cst_27 : f32 to vector<16x16xf32>
    %68 = arith.mulf %67, %64 : vector<16x16xf32>
    %69 = arith.select %66, %64, %68 : vector<16x16xi1>, vector<16x16xf32>
    %cst_28 = arith.constant -1.000000e+30 : f32
    %70 = vector.broadcast %cst_28 : f32 to vector<16x16xf32>
    %71 = arith.select %11, %69, %70 : vector<16x16xi1>, vector<16x16xf32>
    %cst_29 = arith.constant dense<0xFF800000> : vector<16xf32>
    %72 = vector.multi_reduction <maximumf>, %71, %cst_29 [1] : vector<16x16xf32> to vector<16xf32>
    %73 = vector.shape_cast %72 : vector<16xf32> to vector<16x1xf32>
    %74 = vector.broadcast %73 : vector<16x1xf32> to vector<16x16xf32>
    %75 = arith.subf %71, %74 : vector<16x16xf32>
    %76 = math.exp %75 : vector<16x16xf32>
    %cst_30 = arith.constant dense<0.000000e+00> : vector<16xf32>
    %77 = vector.multi_reduction <add>, %76, %cst_30 [1] : vector<16x16xf32> to vector<16xf32>
    %78 = vector.shape_cast %77 : vector<16xf32> to vector<16x1xf32>
    %79 = tpu.reciprocal %78 {approx = true} : vector<16x1xf32> -> vector<16x1xf32>
    %80 = vector.broadcast %79 : vector<16x1xf32> to vector<16x16xf32>
    %81 = arith.mulf %76, %80 : vector<16x16xf32>
    %82 = vector.extract_strided_slice %2 {offsets = [0, 32], sizes = [16, 16], strides = [1, 1]} : vector<16x64xf32> to vector<16x16xf32>
    %cst_31 = arith.constant dense<0.000000e+00> : vector<16x16xf32>
    %83 = tpu.matmul %81, %82, %cst_31 {dimension_numbers = #tpu.dot_dimension_numbers<[1], [0], [0], [1], [0, 0, 1, 1], [], []>} : vector<16x16xf32>, vector<16x16xf32>, vector<16x16xf32> -> vector<16x16xf32>
    %84 = vector.extract_strided_slice %8 {offsets = [0, 3], sizes = [16, 1], strides = [1, 1]} : vector<16x4xf32> to vector<16x1xf32>
    %85 = vector.extract_strided_slice %6 {offsets = [3, 0], sizes = [1, 16], strides = [1, 1]} : vector<4x16xf32> to vector<1x16xf32>
    %86 = vector.broadcast %84 : vector<16x1xf32> to vector<16x16xf32>
    %87 = vector.broadcast %85 : vector<1x16xf32> to vector<16x16xf32>
    %88 = arith.addf %86, %87 : vector<16x16xf32>
    %cst_32 = arith.constant 0.000000e+00 : f32
    %89 = vector.broadcast %cst_32 : f32 to vector<16x16xf32>
    %90 = arith.cmpf ogt, %88, %89 : vector<16x16xf32>
    %cst_33 = arith.constant 2.000000e-01 : f32
    %91 = vector.broadcast %cst_33 : f32 to vector<16x16xf32>
    %92 = arith.mulf %91, %88 : vector<16x16xf32>
    %93 = arith.select %90, %88, %92 : vector<16x16xi1>, vector<16x16xf32>
    %cst_34 = arith.constant -1.000000e+30 : f32
    %94 = vector.broadcast %cst_34 : f32 to vector<16x16xf32>
    %95 = arith.select %11, %93, %94 : vector<16x16xi1>, vector<16x16xf32>
    %cst_35 = arith.constant dense<0xFF800000> : vector<16xf32>
    %96 = vector.multi_reduction <maximumf>, %95, %cst_35 [1] : vector<16x16xf32> to vector<16xf32>
    %97 = vector.shape_cast %96 : vector<16xf32> to vector<16x1xf32>
    %98 = vector.broadcast %97 : vector<16x1xf32> to vector<16x16xf32>
    %99 = arith.subf %95, %98 : vector<16x16xf32>
    %100 = math.exp %99 : vector<16x16xf32>
    %cst_36 = arith.constant dense<0.000000e+00> : vector<16xf32>
    %101 = vector.multi_reduction <add>, %100, %cst_36 [1] : vector<16x16xf32> to vector<16xf32>
    %102 = vector.shape_cast %101 : vector<16xf32> to vector<16x1xf32>
    %103 = tpu.reciprocal %102 {approx = true} : vector<16x1xf32> -> vector<16x1xf32>
    %104 = vector.broadcast %103 : vector<16x1xf32> to vector<16x16xf32>
    %105 = arith.mulf %100, %104 : vector<16x16xf32>
    %106 = vector.extract_strided_slice %2 {offsets = [0, 48], sizes = [16, 16], strides = [1, 1]} : vector<16x64xf32> to vector<16x16xf32>
    %cst_37 = arith.constant dense<0.000000e+00> : vector<16x16xf32>
    %107 = tpu.matmul %105, %106, %cst_37 {dimension_numbers = #tpu.dot_dimension_numbers<[1], [0], [0], [1], [0, 0, 1, 1], [], []>} : vector<16x16xf32>, vector<16x16xf32>, vector<16x16xf32> -> vector<16x16xf32>
    %108 = tpu.concatenate %35, %59, %83, %107 in 1 : vector<16x16xf32>, vector<16x16xf32>, vector<16x16xf32>, vector<16x16xf32> -> vector<16x64xf32>
    %c0_38 = arith.constant 0 : index
    %c0_39 = arith.constant 0 : index
    %109 = vector.load %arg6[%c0_38, %c0_39] : memref<1x64xf32, #tpu.memory_space<vmem>>, vector<1x64xf32>
    %110 = vector.broadcast %109 : vector<1x64xf32> to vector<16x64xf32>
    %111 = arith.addf %108, %110 : vector<16x64xf32>
    %cst_40 = arith.constant 0.000000e+00 : f32
    %112 = vector.broadcast %cst_40 : f32 to vector<16x64xf32>
    %113 = arith.cmpf ogt, %111, %112 : vector<16x64xf32>
    %cst_41 = arith.constant 0.000000e+00 : f32
    %114 = vector.broadcast %cst_41 : f32 to vector<16x64xf32>
    %115 = arith.minimumf %111, %114 : vector<16x64xf32>
    %116 = math.exp %115 : vector<16x64xf32>
    %cst_42 = arith.constant 1.000000e+00 : f32
    %117 = vector.broadcast %cst_42 : f32 to vector<16x64xf32>
    %118 = arith.subf %116, %117 : vector<16x64xf32>
    %119 = arith.select %113, %111, %118 : vector<16x64xi1>, vector<16x64xf32>
    %c0_43 = arith.constant 0 : index
    %c0_44 = arith.constant 0 : index
    %120 = vector.load %arg8[%c0_43, %c0_44] : memref<1x64xf32, #tpu.memory_space<vmem>>, vector<1x64xf32>
    %cst_45 = arith.constant dense<0.000000e+00> : vector<1x16xf32>
    %121 = tpu.matmul %120, %119, %cst_45 {dimension_numbers = #tpu.dot_dimension_numbers<[1], [1], [0], [0], [0, 0, 1, 0], [], []>} : vector<1x64xf32>, vector<16x64xf32>, vector<1x16xf32> -> vector<1x16xf32>
    %c0_46 = arith.constant 0 : index
    %c0_47 = arith.constant 0 : index
    %122 = vector.load %arg9[%c0_46, %c0_47] : memref<1x1xf32, #tpu.memory_space<vmem>>, vector<1x1xf32>
    %123 = vector.broadcast %122 : vector<1x1xf32> to vector<1x16xf32>
    %124 = arith.addf %121, %123 : vector<1x16xf32>
    %c0_48 = arith.constant 0 : index
    %c0_49 = arith.constant 0 : index
    %125 = vector.load %arg10[%c0_48, %c0_49] : memref<1x16xf32, #tpu.memory_space<vmem>>, vector<1x16xf32>
    tpu.vector_store %arg10[%c0_48, %c0_49], %124 {strides = array<i32>} : memref<1x16xf32, #tpu.memory_space<vmem>>, vector<1x16xf32>,
    return
  }
  func.func @transform_0(%arg0: i32) -> (i32, i32) {
    %c0_i32 = arith.constant 0 : i32
    %c0_i32_0 = arith.constant 0 : i32
    %c0_i32_1 = arith.constant 0 : i32
    return %c0_i32, %c0_i32_0 : i32, i32
  }
  func.func @transform_1(%arg0: i32) -> (i32, i32) {
    %c0_i32 = arith.constant 0 : i32
    %c0_i32_0 = arith.constant 0 : i32
    return %arg0, %c0_i32 : i32, i32
  }
  func.func @transform_2(%arg0: i32) -> (i32, i32) {
    %c0_i32 = arith.constant 0 : i32
    %c0_i32_0 = arith.constant 0 : i32
    %c0_i32_1 = arith.constant 0 : i32
    return %c0_i32, %c0_i32_0 : i32, i32
  }
  func.func @transform_3(%arg0: i32) -> (i32, i32) {
    %c0_i32 = arith.constant 0 : i32
    %c0_i32_0 = arith.constant 0 : i32
    %c0_i32_1 = arith.constant 0 : i32
    return %c0_i32, %c0_i32_0 : i32, i32
  }
  func.func @transform_4(%arg0: i32) -> (i32, i32) {
    %c0_i32 = arith.constant 0 : i32
    %c0_i32_0 = arith.constant 0 : i32
    %c0_i32_1 = arith.constant 0 : i32
    return %c0_i32, %c0_i32_0 : i32, i32
  }
  func.func @transform_5(%arg0: i32) -> (i32, i32) {
    %c0_i32 = arith.constant 0 : i32
    %c0_i32_0 = arith.constant 0 : i32
    %c0_i32_1 = arith.constant 0 : i32
    return %c0_i32, %c0_i32_0 : i32, i32
  }
  func.func @transform_6(%arg0: i32) -> (i32, i32) {
    %c0_i32 = arith.constant 0 : i32
    %c0_i32_0 = arith.constant 0 : i32
    return %arg0, %c0_i32 : i32, i32
  }
  func.func @transform_7(%arg0: i32) -> (i32, i32) {
    %c0_i32 = arith.constant 0 : i32
    %c0_i32_0 = arith.constant 0 : i32
    %c0_i32_1 = arith.constant 0 : i32
    return %c0_i32, %c0_i32_0 : i32, i32
  }
  func.func @transform_8(%arg0: i32) -> (i32, i32) {
    %c0_i32 = arith.constant 0 : i32
    %c0_i32_0 = arith.constant 0 : i32
    %c0_i32_1 = arith.constant 0 : i32
    return %c0_i32, %c0_i32_0 : i32, i32
  }
  func.func @transform_9(%arg0: i32) -> (i32, i32) {
    %c0_i32 = arith.constant 0 : i32
    %c0_i32_0 = arith.constant 0 : i32
    return %c0_i32, %arg0 : i32, i32
  }
}

</mosaic_0001>

<bundles_post_ra>
// kernel: tpu_custom_call.1
= control target key start
LH: loop header
LB: loop body
LE: loop exit
PB: predicated region body
PF: predicated region fallthrough
CT: control target
= control target key end

     0   :  { %s1583_s0 = inlined_call_operand.vmem [shape: f32[16,8], index: 0, kind: input, shape index: {}]   ;;  %s1584_s1 = inlined_call_operand.vmem [shape: f32[16,8], index: 1, kind: input, shape index: {}]   ;;  %s1585_s2 = inlined_call_operand.vmem [shape: f32[8,64], index: 2, kind: input, shape index: {}]   ;;  %s1586_s3 = inlined_call_operand.vmem [shape: f32[4,64], index: 3, kind: input, shape index: {}]   ;;  %s1587_s4 = inlined_call_operand.vmem [shape: f32[64,4], index: 4, kind: input, shape index: {}]   ;;  %s1588_s5 = inlined_call_operand.vmem [shape: f32[1,64], index: 5, kind: input, shape index: {}]   ;;  %s1589_s6 = inlined_call_operand.vmem [shape: s8[16,16], index: 6, kind: input, shape index: {}]   ;;  %s1590_s7 = inlined_call_operand.vmem [shape: f32[1,64], index: 7, kind: input, shape index: {}]   ;;  %s1591_s8 = inlined_call_operand.<no memory space> [shape: f32[1,1], index: 8, kind: input, shape index: {}]   ;;  %s1592_s9 = inlined_call_operand.hbm [shape: f32[1,16], index: 9, kind: output, shape index: {}]  }
   0x1   :  { %v14_v0 = vstv %s1591_s8 }
   0x2   :  { %15 = vst [vmem:[#allocation2] sm:$0x1] %v14_v0 }
   0x3   :  { %v37_v1 = vld [vmem:[%s1585_s2] sm:$0xff]  ;;  %vm40_vm0 = vcmask 64512   ;;  %v123_v3 = vld [vmem:[%s1584_s1 + $0x8] sm:$0xff]  ;;  %v288_v8 = vld [vmem:[%s1587_s4 + $0x10] sm:$0xff] }
   0x4   :  { %v122_v2 = vld [vmem:[%s1584_s1] sm:$0xff]  ;;  %1131 = vmatprep.subr.mxu1 %v37_v1  ;;  %v39_v5 = vld [vmem:[%s1583_s0 + $0x8] sm:$0xff]  ;;  %1126 = vmatprep.subr.mxu0 %v37_v1  ;;  %v289_v9 = vld [vmem:[%s1587_s4 + $0x18] sm:$0xff] }
   0x5   :  { %1133 = vmatprep.mubr.msk.f32.mxu1 %vm40_vm0, %v122_v2  ;;  %v38_v4 = vld [vmem:[%s1583_s0] sm:$0xff]  ;;  %1132 = vmatpush3.msra.mxu1 %v37_v1  ;;  %v287_v7 = vld [vmem:[%s1587_s4 + $0x8] sm:$0xff]  ;;  %v1205_v11 = vpack.c.bf16 %v289_v9, %v288_v8 }
   0x6   :  { %v286_v6 = vld [vmem:[%s1587_s4] sm:$0xff]  ;;  %1134 = vmatmul.mubr.msk.f32.vlgmr.msra.gmra.mrb[0].mxu1 %vm40_vm0, %v123_v3  ;;  %1127 = vmatpush3.msra.mxu0 %v37_v1  ;;  %v291_v13 = vld [vmem:[%s1587_s4 + $0x28] sm:$0xff] }
   0x7   :  { %v1201_v10 = vpack.c.bf16 %v287_v7, %v286_v6  ;;  %1128 = vmatprep.mubr.msk.f32.mxu0 %vm40_vm0, %v38_v4  ;;  %v290_v12 = vld [vmem:[%s1587_s4 + $0x20] sm:$0xff] }
   0x8   :  { %16 = vsyncpa [#allocation4], 0  ;;  %1129 = vmatmul.mubr.msk.f32.vlgmr.msra.gmra.mrb[0].mxu0 %vm40_vm0, %v39_v5  ;;  %v1209_v14 = vpack.c.bf16 %v291_v13, %v290_v12  ;;  %v292_v15 = vld [vmem:[%s1587_s4 + $0x30] sm:$0xff]  ;;  %v293_v16 = vld [vmem:[%s1587_s4 + $0x38] sm:$0xff]  ;;  %v1335_v18 = vmov 0.0|0.0   ;;  %vm1336_vm1 = vmmov 0   ;;  %v389_v36 = vlaneseq }
   0x9   :  { %1202 = vmatprep.subr.bf16.mxu1 %v1201_v10  ;;  %v1213_v17 = vpack.c.bf16 %v293_v16, %v292_v15  ;;  %1197 = vmatprep.subr.bf16.mxu0 %v1335_v18  ;;  %v1337_v19 = vmov 0.0   ;;  %v1338_v20 = vmov 1   ;;  %vm206_vm2 = vcmask 523264   ;;  %v205_v28 = vld [vmem:[%s1586_s3] sm:$0xf]  ;;  %s1343_s16 = smov 80  }
   0xa   :  { %1204 = vmatpush3.bf16.msra.mxu1 %v1201_v10  ;;  %1140 = vmatprep.mubr.msk.f32.mxu0 %vm1336_vm1, %v1337_v19  ;;  %vm1452_vm3 = vmpackc.low %vm206_vm2, %vm206_vm2  ;;  %v1339_v31 = vmov 0   ;;  %v1340_v32 = vmov 2   ;;  %v1341_v35 = vmov 3   ;;  %v1466_v37 = vshrl.u32 %v389_v36, 7  ;;  %v376_v38 = vld [vmem:[%s1589_s6 + $0x2] sm:$0x3] }
   0xb   :  { %1206 = vmatprep.subr.bf16.mxu1 %v1205_v11  ;;  %1251 = vset.pattern.permute.xlu1 %v1338_v20  ;;  %v375_v39 = vld [vmem:[%s1589_s6] sm:$0x3]  ;;  %vm378_vm4 = vnez %v376_v38  ;;  %vm409_vm7 = vcmask 130048   ;;  %s1342_s6 = smov 112   ;;  %s1344_s17 = smov 96  }
   0xc   :  { %1253 = vset.pattern.permute.xlu0 %v1338_v20  ;;  %v523_v40 = vsub.s32 1, %v1466_v37  ;;  %vm377_vm5 = vnez %v375_v39  ;;  %v402_v41 = vsel %vm378_vm4, 16843009, %v1339_v31  ;;  %v391_v46 = vsub.s32 0, %v1466_v37  ;;  %s1345_s18 = smov 16   ;;  %s1346_s8 = smov 32  }
   0xd   :  { %v401_v43 = vsel %vm377_vm5, 16843009, %v1339_v31  ;;  %v404_v44 = vunpack.c.0.s8 %v402_v41  ;;  %v654_v58 = vsub.s32 2, %v1466_v37  ;;  %v785_v7 = vsub.s32 3, %v1466_v37  ;;  %s1347_s19 = smov 48   ;;  %s1348_s22 = smov [#allocation3]  }
   0xe   :  { %1208 = vmatpush3.bf16.msra.mxu1 %v1205_v11  ;;  %v403_v47 = vunpack.c.0.s8 %v401_v43  ;;  %vm935_vm4 = vcmask 392192   ;;  %s1057_s1 = sshll.u32 %s1348_s22, 4  ;;  %s1058_s1 = int_to_ptr.vmem [resolvable:$true] %s1057_s1 }
   0xf   :  { %1210 = vmatprep.subr.bf16.mxu1 %v1209_v14  ;;  %vm1477_vm6 = vcmp.ne.s32.totalorder %v404_v44, 0  ;;  %s1311_s23 = scalar_lea.vmem %s1058_s1, 16  ;;  %s1315_s24 = scalar_lea.vmem %s1058_s1, 32 }
  0x10   :  { %vm1484_vm9 = vcmp.ne.s32.totalorder %v403_v47, 0  ;;  %p1312_p0 = scmp.ne.s32.totalorder %s1058_s1, %s1311_s23  ;;  %p1316_p1 = scmp.lt.s32.totalorder %s1058_s1, %s1058_s1 }
  0x11   :  { %p1317_p2 = scmp.lt.s32.totalorder %s1315_s24, %s1311_s23 }
  0x12   :  { %1212 = vmatpush3.bf16.msra.mxu1 %v1209_v14 }
  0x13   :  { %1214 = vmatprep.subr.bf16.mxu1 %v1213_v17  ;;  %p1318_p3 = por %p1317_p2, %p1316_p1 }
  0x15   :  { %p1319_p4 = pnand %p1318_p3, %p1312_p0 }
  0x16   :  { %1216 = vmatpush3.bf16.msra.mxu1 %v1213_v17 }
  0xd9   :  { %v1135_v21 = vpop.f32.mrb[0].mxu1 }
  0xda   :  { %v196_v22 = vpop.f32.mrb[1].mxu1 }
  0xdb   :  { %1159 = vmatprep.mubr.msk.f32.mxu1 %vm206_vm2, %v196_v22  ;;  %v1130_v23 = vpop.f32.mrb[0].mxu0 }
  0xdc   :  { %1160 = vmatmul.mubr.msk.f32.vlgmr.msra.gmra.mrb[2].mxu1 %vm206_vm2, %v1135_v21  ;;  %v113_v24 = vpop.f32.mrb[1].mxu0 }
  0xdd   :  { %v1198_v26 = vpack.c.bf16 %v1130_v23, %v113_v24  ;;  %v1456_v27 = vpack.i.bf16 %v1130_v23, %v113_v24 }
  0xdf   :  { %1200 = vmatpush3.bf16.xpose.msk.msra.mxu0 %vm1452_vm3, %v1198_v26  ;;  %1218 = vmatprep.subr.bf16.mxu1 %v1198_v26 }
  0xe0   :  { %1220 = vmatpush3.bf16.msra.mxu1 %v1198_v26 }
  0xe6   :  { %1141 = vmatmul.mubr.msk.f32.vlgmr.msra.gmra.mrb[2].mxu0 %vm206_vm2, %v205_v28 }
 0x1af   :  { %v1161_v29 = vpop.f32.mrb[2].mxu1 }
 0x1b0   :  { %518 = vperm.xlu1 %1251, %v1161_v29   ;;  %v366_v30 = vpop.f32.mrb[3].mxu1 }
 0x1b1   :  { %514 = vperm.xlu0 %1253, %v366_v30  }
 0x1b4   :  { %1252 = vset.pattern.permute.xlu1 %v1339_v31 }
 0x1b5   :  { %386 = vperm.xlu1 %1252, %v1161_v29   ;;  %1254 = vset.pattern.permute.xlu0 %v1339_v31 }
 0x1b6   :  { %381 = vperm.xlu0 %1254, %v366_v30  }
 0x1b9   :  { %1256 = vset.pattern.permute.xlu1 %v1340_v32  ;;  %v1464_v33 = vpop.f32.mrb[2].mxu0 }
 0x1ba   :  { %645 = vperm.xlu1 %1256, %v366_v30   ;;  %1255 = vset.pattern.permute.xlu0 %v1340_v32  ;;  %v1142_v34 = vpop.f32.mrb[3].mxu0  ;;  %v524_v42 = vrot.slane %v1464_v33, %v523_v40  ;;  %v392_v54 = vrot.slane %v1464_v33, %v391_v46  ;;  %v655_v4 = vrot.slane %v1464_v33, %v654_v58 }
 0x1bb   :  { %649 = vperm.xlu0 %1255, %v1161_v29   ;;  %v786_v20 = vrot.slane %v1464_v33, %v785_v7 }
 0x1be   :  { %1257 = vset.pattern.permute.xlu1 %v1341_v35 }
 0x1bf   :  { %776 = vperm.xlu1 %1257, %v366_v30   ;;  %1274 = vset.pattern.permute.xlu0 %v1339_v31 }
 0x1c3   :  { %780 = vperm.xlu1 %1257, %v1161_v29  }
 0x1c7   :  { %1273 = vset.pattern.permute.xlu1 %v1339_v31 }
 0x22f   :  { %v519_v45 = vpop.permute.xlu1 %518 }
 0x230   :  { %v526_v48 = vadd.f32 %v524_v42, %v519_v45  ;;  %v515_v49 = vpop.permute.xlu0 %514 }
 0x231   :  { %v525_v50 = vadd.f32 %v524_v42, %v515_v49 }
 0x232   :  { %v530_v51 = vmul.f32 0.2, %v526_v48  ;;  %vm528_vm8 = vcmp.gt.f32.partialorder %v526_v48, 0.0 }
 0x233   :  { %v529_v53 = vmul.f32 0.2, %v525_v50  ;;  %vm527_vm10 = vcmp.gt.f32.partialorder %v525_v50, 0.0 }
 0x234   :  { %v387_v56 = vpop.permute.xlu1 %386  ;;  %v532_v57 = vsel %vm528_vm8, %v526_v48, %v530_v51 }
 0x235   :  { %v394_v59 = vadd.f32 %v392_v54, %v387_v56  ;;  %v382_v60 = vpop.permute.xlu0 %381  ;;  %v534_v61 = vsel %vm1477_vm6, %v532_v57, -1e+30  ;;  %v531_v62 = vsel %vm527_vm10, %v525_v50, %v529_v53 }
 0x236   :  { %v393_v63 = vadd.f32 %v392_v54, %v382_v60  ;;  %v538_v0 = vsel %vm409_vm7, %v534_v61, -inf  ;;  %v1494_v1 = vsel %vm1484_vm9, %v531_v62, -1e+30 }
 0x237   :  { %v398_v2 = vmul.f32 0.2, %v394_v59  ;;  %539 = vmax.xlane.f32.xlu0 %v538_v0  ;;  %vm396_vm11 = vcmp.gt.f32.partialorder %v394_v59, 0.0  ;;  %v535_v24 = vsel %vm409_vm7, %v1494_v1, -inf }
 0x238   :  { %v397_v3 = vmul.f32 0.2, %v393_v63  ;;  %vm395_vm12 = vcmp.gt.f32.partialorder %v393_v63, 0.0 }
 0x239   :  { %v646_v5 = vpop.permute.xlu1 %645  ;;  %v400_v6 = vsel %vm396_vm11, %v394_v59, %v398_v2 }
 0x23a   :  { %v656_v8 = vadd.f32 %v655_v4, %v646_v5  ;;  %v650_v9 = vpop.permute.xlu0 %649  ;;  %v408_v10 = vsel %vm1477_vm6, %v400_v6, -1e+30  ;;  %v399_v11 = vsel %vm395_vm12, %v393_v63, %v397_v3 }
 0x23b   :  { %v657_v12 = vadd.f32 %v655_v4, %v650_v9  ;;  %v413_v13 = vsel %vm409_vm7, %v408_v10, -inf  ;;  %v1503_v14 = vsel %vm1484_vm9, %v399_v11, -1e+30 }
 0x23c   :  { %v660_v15 = vmul.f32 0.2, %v656_v8  ;;  %414 = vmax.xlane.f32.xlu0 %v413_v13  ;;  %v410_v16 = vsel %vm409_vm7, %v1503_v14, -inf  ;;  %vm658_vm13 = vcmp.gt.f32.partialorder %v656_v8, 0.0 }
 0x23d   :  { %v661_v17 = vmul.f32 0.2, %v657_v12  ;;  %411 = vmax.xlane.f32.xlu1 %v410_v16  ;;  %vm659_vm14 = vcmp.gt.f32.partialorder %v657_v12, 0.0 }
 0x23e   :  { %v777_v21 = vpop.permute.xlu1 %776  ;;  %v662_v22 = vsel %vm658_vm13, %v656_v8, %v660_v15 }
 0x23f   :  { %v787_v23 = vadd.f32 %v786_v20, %v777_v21  ;;  %v664_v26 = vsel %vm1484_vm9, %v662_v22, -1e+30  ;;  %v663_v28 = vsel %vm659_vm14, %v657_v12, %v661_v17 }
 0x240   :  { %536 = vmax.xlane.f32.xlu0 %v535_v24  ;;  %v666_v29 = vsel %vm409_vm7, %v664_v26, -inf  ;;  %v665_v30 = vsel %vm1477_vm6, %v663_v28, -1e+30 }
 0x241   :  { %v791_v31 = vmul.f32 0.2, %v787_v23  ;;  %667 = vmax.xlane.f32.xlu1 %v666_v29  ;;  %vm789_vm15 = vcmp.gt.f32.partialorder %v787_v23, 0.0  ;;  %v669_v34 = vsel %vm409_vm7, %v665_v30, -inf }
 0x242   :  { %v781_v32 = vpop.permute.xlu1 %780 }
 0x243   :  { %v788_v33 = vadd.f32 %v786_v20, %v781_v32  ;;  %v793_v35 = vsel %vm789_vm15, %v787_v23, %v791_v31 }
 0x244   :  { %670 = vmax.xlane.f32.xlu0 %v669_v34  ;;  %v795_v36 = vsel %vm1484_vm9, %v793_v35, -1e+30 }
 0x245   :  { %v792_v38 = vmul.f32 0.2, %v788_v33  ;;  %v797_v39 = vsel %vm409_vm7, %v795_v36, -inf  ;;  %vm790_vm0 = vcmp.gt.f32.partialorder %v788_v33, 0.0 }
 0x246   :  { %798 = vmax.xlane.f32.xlu1 %v797_v39 }
 0x247   :  { %v794_v40 = vsel %vm790_vm0, %v788_v33, %v792_v38 }
 0x248   :  { %v796_v41 = vsel %vm1477_vm6, %v794_v40, -1e+30 }
 0x249   :  { %v800_v42 = vsel %vm409_vm7, %v796_v41, -inf }
 0x24a   :  { %801 = vmax.xlane.f32.xlu0 %v800_v42 }
 0x257   :  { %1259 = vrot.lane.b32.xlu1 %v1456_v27, %s1342_s6 }
 0x2c4   :  { %v540_v43 = vpop.xlane.xlu0 %539 }
 0x2c5   :  { %v542_v44 = vsub.f32 %v534_v61, %v540_v43 }
 0x2c7   :  { %v545_v45 = vmul.f32 1.442695, %v542_v44 }
 0x2c9   :  { %1275 = vpow2.f32 %v545_v45  ;;  %v415_v47 = vpop.xlane.xlu0 %414 }
 0x2ca   :  { %v417_v48 = vsub.f32 %v408_v10, %v415_v47  ;;  %v412_v49 = vpop.xlane.xlu1 %411 }
 0x2cb   :  { %v416_v0 = vsub.f32 %v1503_v14, %v412_v49 }
 0x2cc   :  { %v420_v50 = vmul.f32 1.442695, %v417_v48 }
 0x2cd   :  { %v537_v51 = vpop.xlane.xlu0 %536  ;;  %v418_v9 = vmul.f32 1.442695, %v416_v0 }
 0x2ce   :  { %1277 = vpow2.f32 %v420_v50  ;;  %v541_v53 = vsub.f32 %v1494_v1, %v537_v51  ;;  %v668_v52 = vpop.xlane.xlu1 %667 }
 0x2cf   :  { %v672_v54 = vsub.f32 %v664_v26, %v668_v52 }
 0x2d0   :  { %v543_v55 = vmul.f32 1.442695, %v541_v53 }
 0x2d1   :  { %v674_v56 = vmul.f32 1.442695, %v672_v54  ;;  %v671_v57 = vpop.xlane.xlu0 %670 }
 0x2d2   :  { %1279 = vpow2.f32 %v543_v55  ;;  %v673_v58 = vsub.f32 %v665_v30, %v671_v57 }
 0x2d3   :  { %v1524_v59 = vpop.eup %1275  ;;  %v799_v60 = vpop.xlane.xlu1 %798  ;;  %1281 = vpow2.f32 %v674_v56 }
 0x2d4   :  { %v676_v61 = vmul.f32 1.442695, %v673_v58  ;;  %v803_v62 = vsub.f32 %v795_v36, %v799_v60  ;;  %v550_v63 = vsel %vm409_vm7, %v1524_v59, 0.0 }
 0x2d5   :  { %551 = vadd.xlane.f32.xlu1 %v550_v63 }
 0x2d6   :  { %1283 = vpow2.f32 %v676_v61  ;;  %v805_v1 = vmul.f32 1.442695, %v803_v62 }
 0x2d7   :  { %v802_v2 = vpop.xlane.xlu0 %801  ;;  %v1260_v3 = vpop.permute.xlu1 %1259 }
 0x2d8   :  { %v1529_v4 = vpop.eup %1277  ;;  %1285 = vpow2.f32 %v805_v1  ;;  %v804_v5 = vsub.f32 %v796_v41, %v802_v2  ;;  %v1262_v6 = vunpack.i.h.bf16 %v1260_v3  ;;  %v1261_v7 = vunpack.i.l.bf16 %v1260_v3  ;;  %v960_v3 = vld [vmem:[#allocation2] sm:$0x1] }
 0x2d9   :  { %v425_v8 = vsel %vm409_vm7, %v1529_v4, 0.0 }
 0x2da   :  { %v807_v10 = vmul.f32 1.442695, %v804_v5  ;;  %v1221_v11 = vpack.c.bf16 %v1262_v6, %v1261_v7  ;;  %426 = vadd.xlane.f32.xlu0 %v425_v8 }
 0x2dc   :  { %v1280_v12 = vpop.eup %1279  ;;  %1287 = vpow2.f32 %v807_v10  ;;  %1222 = vmatprep.subr.bf16.mxu0 %v1221_v11 }
 0x2dd   :  { %1224 = vmatpush3.bf16.msra.mxu0 %v1221_v11  ;;  %v547_v13 = vsel %vm409_vm7, %v1280_v12, 0.0  ;;  %v1282_v14 = vpop.eup %1281  ;;  %1289 = vpow2.f32 %v418_v9  ;;  %v1082_v9 = vld [vmem:[%s1588_s5] ss:$0 sm:$0xff] }
 0x2de   :  { %548 = vadd.xlane.f32.xlu1 %v547_v13  ;;  %v678_v17 = vsel %vm409_vm7, %v1282_v14, 0.0 }
 0x2e0   :  { %v1284_v15 = vpop.eup %1283 }
 0x2e1   :  { %v681_v16 = vsel %vm409_vm7, %v1284_v15, 0.0 }
 0x2e2   :  { %v1286_v20 = vpop.eup %1285  ;;  %682 = vadd.xlane.f32.xlu0 %v681_v16  ;;  %679 = vadd.xlane.f32.xlu1 %v678_v17 }
 0x2e3   :  { %v809_v21 = vsel %vm409_vm7, %v1286_v20, 0.0 }
 0x2e6   :  { %v1537_v22 = vpop.eup %1287  ;;  %810 = vadd.xlane.f32.xlu1 %v809_v21 }
 0x2e7   :  { %v812_v23 = vsel %vm409_vm7, %v1537_v22, 0.0  ;;  %v1290_v24 = vpop.eup %1289 }
 0x2e8   :  { %813 = vadd.xlane.f32.xlu0 %v812_v23  ;;  %v422_v26 = vsel %vm409_vm7, %v1290_v24, 0.0 }
 0x2ec   :  { %423 = vadd.xlane.f32.xlu0 %v422_v26 }
 0x2f7   :  { %1269 = vrot.lane.b32.xlu1 %v1456_v27, %s1343_s16 }
 0x302   :  { %1264 = vrot.lane.b32.xlu0 %v1456_v27, %s1344_s17 }
 0x362   :  { %v552_v28 = vpop.xlane.xlu1 %551 }
 0x363   :  { %1291 = vrcp.f32 %v552_v28 }
 0x367   :  { %v427_v30 = vpop.xlane.xlu0 %426 }
 0x36b   :  { %v549_v29 = vpop.xlane.xlu1 %548 }
 0x36c   :  { %1293 = vrcp.f32 %v549_v29 }
 0x36d   :  { %v1292_v34 = vpop.eup %1291 }
 0x36e   :  { %v556_v40 = vmul.f32 %v1292_v34, %v1524_v59  ;;  %v959_v34 = vld [vmem:[%s1590_s7] sm:$0x1] }
 0x36f   :  { %v680_v31 = vpop.xlane.xlu1 %679  ;;  %v683_v32 = vpop.xlane.xlu0 %682 }
 0x370   :  { %1295 = vrcp.f32 %v680_v31 }
 0x371   :  { %1297 = vrcp.f32 %v683_v32 }
 0x372   :  { %1299 = vrcp.f32 %v427_v30 }
 0x373   :  { %v811_v33 = vpop.xlane.xlu1 %810 }
 0x374   :  { %1301 = vrcp.f32 %v811_v33 }
 0x375   :  { %v814_v35 = vpop.xlane.xlu0 %813 }
 0x376   :  { %v1294_v36 = vpop.eup %1293 }
 0x377   :  { %v1270_v38 = vpop.permute.xlu1 %1269  ;;  %v555_v39 = vmul.f32 %v1294_v36, %v1280_v12 }
 0x378   :  { %v1272_v41 = vunpack.i.h.bf16 %v1270_v38  ;;  %v1271_v27 = vunpack.i.l.bf16 %v1270_v38 }
 0x379   :  { %v424_v42 = vpop.xlane.xlu0 %423  ;;  %1173 = vmatprep.mubr.msk.f32.mxu0 %vm409_vm7, %v555_v39 }
 0x37a   :  { %v1229_v43 = vpack.c.bf16 %v1272_v41, %v1271_v27  ;;  %1303 = vrcp.f32 %v424_v42  ;;  %1174 = vmatmul.mubr.msk.f32.vlgmr.msra.gmra.mrb[4].mxu0 %vm409_vm7, %v556_v40  ;;  %v1296_v44 = vpop.eup %1295 }
 0x37b   :  { %v686_v45 = vmul.f32 %v1296_v44, %v1282_v14  ;;  %1305 = vrcp.f32 %v814_v35  ;;  %v1298_v51 = vpop.eup %1297 }
 0x37c   :  { %1230 = vmatprep.subr.bf16.mxu1 %v1229_v43  ;;  %v1300_v53 = vpop.eup %1299  ;;  %v687_v55 = vmul.f32 %v1298_v51, %v1284_v15 }
 0x37d   :  { %v1265_v47 = vpop.permute.xlu0 %1264  ;;  %1180 = vmatprep.mubr.msk.f32.mxu0 %vm409_vm7, %v686_v45  ;;  %v431_v57 = vmul.f32 %v1300_v53, %v1529_v4 }
 0x37e   :  { %v1267_v48 = vunpack.i.h.bf16 %v1265_v47  ;;  %v1266_v49 = vunpack.i.l.bf16 %v1265_v47  ;;  %v1302_v52 = vpop.eup %1301 }
 0x37f   :  { %v817_v59 = vmul.f32 %v1302_v52, %v1286_v20 }
 0x380   :  { %v1225_v50 = vpack.c.bf16 %v1267_v48, %v1266_v49 }
 0x382   :  { %1226 = vmatprep.subr.bf16.mxu0 %v1225_v50 }
 0x383   :  { %1228 = vmatpush3.bf16.msra.mxu0 %v1225_v50 }
 0x384   :  { %v1304_v54 = vpop.eup %1303  ;;  %1233 = vmatprep.subr.bf16.mxu0 %v1335_v18 }
 0x385   :  { %v430_v56 = vmul.f32 %v1304_v54, %v1290_v24  ;;  %v1306_v58 = vpop.eup %1305 }
 0x386   :  { %1181 = vmatmul.mubr.msk.f32.vlgmr.msra.gmra.mrb[6].mxu0 %vm409_vm7, %v687_v55  ;;  %v818_v60 = vmul.f32 %v1306_v58, %v1537_v22 }
 0x387   :  { %1166 = vmatprep.mubr.msk.f32.mxu1 %vm409_vm7, %v430_v56  ;;  %1194 = vmatprep.mubr.msk.f32.mxu0 %vm1336_vm1, %v1337_v19  ;;  %vm932_vm1 = vcmask 261120  }
 0x388   :  { %1167 = vmatmul.mubr.msk.f32.vlgmr.msra.gmra.mrb[4].mxu1 %vm409_vm7, %v431_v57 }
 0x389   :  { %1232 = vmatpush3.bf16.msra.mxu1 %v1229_v43  ;;  %1187 = vmatprep.mubr.msk.f32.mxu1 %vm409_vm7, %v817_v59 }
 0x38c   :  { %1188 = vmatmul.mubr.msk.f32.vlgmr.msra.gmra.mrb[6].mxu1 %vm409_vm7, %v818_v60 }
 0x44d   :  { %v1175_v18 = vpop.f32.mrb[4].mxu0 }
 0x44e   :  { %910 = vrot.lane.b32.xlu0 %v1175_v18, %s1345_s18  ;;  %v635_v61 = vpop.f32.mrb[5].mxu0 }
 0x44f   :  { %908 = vrot.lane.b32.xlu1 %v635_v61, %s1345_s18 }
 0x459   :  { %v1182_v62 = vpop.f32.mrb[6].mxu0 }
 0x45a   :  { %918 = vrot.lane.b32.xlu0 %v1182_v62, %s1346_s8  ;;  %v766_v63 = vpop.f32.mrb[7].mxu0 }
 0x45b   :  { %v1168_v0 = vpop.f32.mrb[4].mxu1  ;;  %916 = vrot.lane.b32.xlu1 %v766_v63, %s1346_s8 }
 0x45c   :  { %v504_v19 = vpop.f32.mrb[5].mxu1 }
 0x45f   :  { %v1189_v1 = vpop.f32.mrb[6].mxu1 }
 0x460   :  { %v897_v2 = vpop.f32.mrb[7].mxu1  ;;  %926 = vrot.lane.b32.xlu0 %v1189_v1, %s1347_s19 }
 0x461   :  { %924 = vrot.lane.b32.xlu1 %v897_v2, %s1347_s19 }
 0x465   :  { %963 = vperm.xlu1 %1273, %v960_v3  }
 0x4c0   :  { %v911_v4 = vpop.permute.xlu0 %910 }
 0x4c1   :  { %v909_v5 = vpop.permute.xlu1 %908  ;;  %v931_v8 = vsel %vm409_vm7, %v1168_v0, %v911_v4 }
 0x4c2   :  { %v930_v10 = vsel %vm409_vm7, %v504_v19, %v909_v5  ;;  %vm1049_vm7 = vcmask 122880  }
 0x4cc   :  { %v919_v6 = vpop.permute.xlu0 %918 }
 0x4cd   :  { %v917_v7 = vpop.permute.xlu1 %916  ;;  %v934_v11 = vsel %vm932_vm1, %v931_v8, %v919_v6 }
 0x4ce   :  { %v933_v13 = vsel %vm932_vm1, %v930_v10, %v917_v7 }
 0x4d2   :  { %v927_v12 = vpop.permute.xlu0 %926 }
 0x4d3   :  { %v937_v14 = vsel %vm935_vm4, %v934_v11, %v927_v12  ;;  %v925_v15 = vpop.permute.xlu1 %924 }
 0x4d4   :  { %v946_v16 = vadd.f32 %v1082_v9, %v937_v14  ;;  %v936_v17 = vsel %vm935_vm4, %v933_v13, %v925_v15 }
 0x4d5   :  { %v945_v20 = vadd.f32 %v1082_v9, %v936_v17 }
 0x4d6   :  { %v950_v21 = vmin.f32 %v946_v16, 0.0  ;;  %vm948_vm5 = vcmp.gt.f32.partialorder %v946_v16, 0.0 }
 0x4d7   :  { %v949_v22 = vmin.f32 %v945_v20, 0.0  ;;  %vm947_vm6 = vcmp.gt.f32.partialorder %v945_v20, 0.0 }
 0x4d8   :  { %v953_v23 = vmul.f32 1.442695, %v950_v21 }
 0x4d9   :  { %v951_v24 = vmul.f32 1.442695, %v949_v22 }
 0x4da   :  { %1307 = vpow2.f32 %v953_v23 }
 0x4db   :  { %1309 = vpow2.f32 %v951_v24 }
 0x4e4   :  { %v1308_v26 = vpop.eup %1307  ;;  %v964_v35 = vpop.permute.xlu1 %963 }
 0x4e5   :  { %v1310_v28 = vpop.eup %1309  ;;  %v1084_v29 = vadd.f32 -1.0, %v1308_v26  ;;  %v969_v36 = vrot.slane %v964_v35, %v391_v46 }
 0x4e6   :  { %v1083_v30 = vadd.f32 -1.0, %v1310_v28 }
 0x4e7   :  { %v958_v31 = vsel %vm948_vm5, %v946_v16, %v1084_v29 }
 0x4e8   :  { %v957_v32 = vsel %vm947_vm6, %v945_v20, %v1083_v30 }
 0x4e9   :  { %v1234_v33 = vpack.c.bf16 %v958_v31, %v957_v32 }
 0x4eb   :  { %1236 = vmatpush3.bf16.xpose.msk.msra.mxu0 %vm1452_vm3, %v1234_v33 }
 0x4f2   :  { %1195 = vmatmul.mubr.msk.f32.vlgmr.msra.gmra.mrb[8].mxu0 %vm206_vm2, %v959_v34 }
 0x5c5   :  { %v1045_v38 = vpop.f32.mrb[8].mxu0 }
 0x5c6   :  { %v1046_v39 = vadd.f32 %v1045_v38, %v969_v36  ;;  %v1196_v40 = vpop.f32.mrb[9].mxu0 }
 0x5c8   :  { %1050 = vst.msk [vmem:[#allocation3] sm:$0x1] %vm1049_vm7, %v1046_v39 }
 0x5c9   :  { %1322 = shalt.err (!%p1319_p4)
}
 0x5ca   :  { %s1323_s0 = scalar_lea.hbm %s1592_s9, 16 }
 0x5cb   :  { %p1324_p5 = scmp.ne.s32.totalorder %s1592_s9, %s1323_s0  ;;  %p1327_p6 = scmp.lt.u32.totalorder %s1323_s0, %s1592_s9 }
 0x5cd   :  { %p1329_p7 = pnand %p1327_p6, %p1324_p5 }
 0x5cf   :  { %1332 = shalt.err (!%p1329_p7)
}
 0x5d0   :  { %1060 = dma.vmem_to_hbm [thread:$0]  %s1058_s1, 16, %s1592_s9, [#allocation4]  }
 0x5d1   :  { %1333 = dma.done.wait [#allocation4], 16  }
 0x5d2   :  { %1334 = vsyncadd [#allocation4], 4294967280 }
 0x5d3   :  { %1064 = vsyncpa [#allocation4], 1 }

</bundles_post_ra>
